<compile_context>
chip_gen: v6e
topology: v6e:2x2x1
jax: 0.10.0
libtpu: 0.0.40
codegen_flags: <defaults>
</compile_context>

<pallas_src>
import jax
import jax.numpy as jnp
from jax.experimental import pallas as pl
from jax.experimental.pallas import tpu as pltpu


def outconv_kernel(x_ref, w_ref, b_ref, o_ref):
    """One (batch-block, spatial-tile) step of the 1x1 conv.

    x_ref: (bn, Cin, TS)   inputs, channels on sublanes, spatial on lanes
    w_ref: (Cout, Cin)     1x1 conv weight (resident across the grid)
    b_ref: (Cout, 1)       bias in f32 (lane-broadcast)
    o_ref: (bn, Cout, TS)  output tile
    """
    w = w_ref[...]
    bias = b_ref[...]                                   # (Cout, 1), f32
    for i in range(x_ref.shape[0]):                     # static unroll, bn is small
        acc = jnp.dot(w, x_ref[i],                      # (Cout, TS), one MXU matmul
                      preferred_element_type=jnp.float32)
        o_ref[i] = (acc + bias).astype(o_ref.dtype)


def _round_up(x, m):
    return ((x + m - 1) // m) * m


def _plan_tiles(N, cin, cout, hw, dtype_bytes):
    """Pick (batch_block bn, spatial_tile ts, padded spatial extent hw_pad)."""
    cin_p = _round_up(cin, 8)                            # sublane-padded channels
    cout_p = _round_up(cout, 8)
    per_col = (cin_p + cout_p) * dtype_bytes             # in+out bytes / column / image
    budget = 6 * 1024 * 1024                             # double-buffered tile budget
                                                         # (safe under v5e 16 MiB scoped,
                                                         #  v6e 32 MiB, v7x 64 MiB phys)
    ts_cap = min(32768, max(128, (budget // (2 * per_col)) // 128 * 128))
    ts = min(_round_up(hw, 128), ts_cap)                 # lane-aligned spatial tile
    hw_pad = _round_up(hw, ts)
    n_spatial = hw_pad // ts

    # Batch blocking: grow per-step traffic toward ~2 MiB, but keep at least
    # 2 total grid steps (v7x dual TensorCore) and stay inside the VMEM budget.
    tile_bytes = per_col * ts
    bn = 1
    for cand in range(2, N + 1):
        if N % cand:
            continue
        if 2 * cand * tile_bytes > budget:
            break
        if (N // cand) * n_spatial < 2 and N * n_spatial >= 2:
            break
        if bn * tile_bytes >= 2 * 1024 * 1024:
            break
        bn = cand
    return bn, ts, hw_pad


@jax.jit
def out_conv(x_nchw, weight, bias):
    """x_nchw: (N, Cin, H, W); weight: (Cout, Cin, 1, 1); bias: (Cout,).
    Returns (N, Cout, H, W) in x's dtype, matching PyTorch OutConv.forward."""
    N, cin, H, W = x_nchw.shape
    cout = weight.shape[0]
    hw = H * W
    dtype = x_nchw.dtype

    bn, ts, hw_pad = _plan_tiles(N, cin, cout, hw, jnp.dtype(dtype).itemsize)

    x = x_nchw.reshape(N, cin, hw)                       # pure reshape, no transpose
    if hw_pad != hw:
        x = jnp.pad(x, ((0, 0), (0, 0), (0, hw_pad - hw)))
    w = weight.reshape(cout, cin).astype(dtype)          # keep model dtype end-to-end
    b = bias.reshape(cout, 1).astype(jnp.float32)        # bias added in f32 in-kernel

    out = pl.pallas_call(
        outconv_kernel,
        out_shape=jax.ShapeDtypeStruct((N, cout, hw_pad), dtype),
        grid=(N // bn, hw_pad // ts),
        in_specs=[
            pl.BlockSpec((bn, cin, ts), lambda n, s: (n, 0, s)),
            pl.BlockSpec((cout, cin), lambda n, s: (0, 0)),
            pl.BlockSpec((cout, 1), lambda n, s: (0, 0)),
        ],
        out_specs=pl.BlockSpec((bn, cout, ts), lambda n, s: (n, 0, s)),
        compiler_params=pltpu.CompilerParams(
            dimension_semantics=("parallel", "parallel")),
    )(x, w, b)

    if hw_pad != hw:
        out = out[:, :, :hw]
    return out.reshape(N, cout, H, W)


if __name__ == "__main__":
    # Shapes consistent with OutConv(in_channels=4, out_channels=8).
    N, Cin, H, W = 2, 4, 16, 16
    Cout = 8

    key = jax.random.PRNGKey(0)
    k = jax.random.split(key, 3)
    x = jax.random.normal(k[0], (N, Cin, H, W), dtype=jnp.float32)
    weight = jax.random.normal(k[1], (Cout, Cin, 1, 1), dtype=jnp.float32) * 0.1
    bias = jax.random.normal(k[2], (Cout,), dtype=jnp.float32) * 0.1

    out = jax.block_until_ready(out_conv(x, weight, bias))

    # Pure-JAX reference mirroring PyTorch Conv2d(kernel_size=1).
    ref = jnp.einsum("nchw,oc->nohw", x, weight.reshape(Cout, Cin),
                     precision=jax.lax.Precision.HIGHEST) + bias[None, :, None, None]

    assert out.shape == (N, Cout, H, W)
    max_err = float(jnp.max(jnp.abs(out - ref)))
    assert jnp.allclose(out, ref, atol=2e-3, rtol=2e-3), max_err

    print("KERNEL_OK")
</pallas_src>

<mosaic_0001>
module attributes {stable_mosaic.version = 11 : i64} {
  func.func @outconv_kernel(%arg0: i32, %arg1: i32, %arg2: memref<1x4x256xf32, #tpu.memory_space<vmem>>, %arg3: memref<8x4xf32, #tpu.memory_space<vmem>>, %arg4: memref<8x1xf32, #tpu.memory_space<vmem>>, %arg5: memref<1x8x256xf32, #tpu.memory_space<vmem>>) attributes {dimension_semantics = [#tpu.dimension_semantics<parallel>, #tpu.dimension_semantics<parallel>], iteration_bounds = array<i64: 2, 1>, scalar_prefetch = 0 : i64, scratch_operands = 0 : i64, tpu.core_type = #tpu.core_type<tc>, window_params = [{transform_indices = @transform_0, window_bounds = array<i64: 1, 4, 256>}, {pipeline_mode = #tpu.pipeline_mode<synchronous>, transform_indices = @transform_1, window_bounds = array<i64: 8, 4>}, {pipeline_mode = #tpu.pipeline_mode<synchronous>, transform_indices = @transform_2, window_bounds = array<i64: 8, 1>}, {transform_indices = @transform_3, window_bounds = array<i64: 1, 8, 256>}]} {
    %c0 = arith.constant 0 : index
    %c0_0 = arith.constant 0 : index
    %0 = vector.load %arg3[%c0, %c0_0] : memref<8x4xf32, #tpu.memory_space<vmem>>, vector<8x4xf32>
    %c0_1 = arith.constant 0 : index
    %c0_2 = arith.constant 0 : index
    %1 = vector.load %arg4[%c0_1, %c0_2] : memref<8x1xf32, #tpu.memory_space<vmem>>, vector<8x1xf32>
    %c0_3 = arith.constant 0 : index
    %c0_4 = arith.constant 0 : index
    %c0_5 = arith.constant 0 : index
    %2 = vector.load %arg2[%c0_3, %c0_4, %c0_5] : memref<1x4x256xf32, #tpu.memory_space<vmem>>, vector<1x4x256xf32>
    %3 = vector.shape_cast %2 : vector<1x4x256xf32> to vector<4x256xf32>
    %cst = arith.constant dense<0.000000e+00> : vector<8x256xf32>
    %4 = tpu.matmul %0, %3, %cst {dimension_numbers = #tpu.dot_dimension_numbers<[1], [0], [0], [1], [0, 0, 1, 1], [], []>} : vector<8x4xf32>, vector<4x256xf32>, vector<8x256xf32> -> vector<8x256xf32>
    %5 = vector.broadcast %1 : vector<8x1xf32> to vector<8x256xf32>
    %6 = arith.addf %4, %5 : vector<8x256xf32>
    %c0_6 = arith.constant 0 : index
    %c0_7 = arith.constant 0 : index
    %c0_8 = arith.constant 0 : index
    %7 = vector.load %arg5[%c0_6, %c0_7, %c0_8] : memref<1x8x256xf32, #tpu.memory_space<vmem>>, vector<1x8x256xf32>
    %8 = vector.shape_cast %7 : vector<1x8x256xf32> to vector<8x256xf32>
    %9 = vector.shape_cast %6 : vector<8x256xf32> to vector<1x8x256xf32>
    tpu.vector_store %arg5[%c0_6, %c0_7, %c0_8], %9 {strides = array<i32>} : memref<1x8x256xf32, #tpu.memory_space<vmem>>, vector<1x8x256xf32>,
    return
  }
  func.func @transform_0(%arg0: i32, %arg1: i32) -> (i32, i32, i32) {
    %c0_i32 = arith.constant 0 : i32
    %c0_i32_0 = arith.constant 0 : i32
    return %arg0, %c0_i32, %arg1 : i32, i32, i32
  }
  func.func @transform_1(%arg0: i32, %arg1: i32) -> (i32, i32) {
    %c0_i32 = arith.constant 0 : i32
    %c0_i32_0 = arith.constant 0 : i32
    %c0_i32_1 = arith.constant 0 : i32
    return %c0_i32, %c0_i32_0 : i32, i32
  }
  func.func @transform_2(%arg0: i32, %arg1: i32) -> (i32, i32) {
    %c0_i32 = arith.constant 0 : i32
    %c0_i32_0 = arith.constant 0 : i32
    %c0_i32_1 = arith.constant 0 : i32
    return %c0_i32, %c0_i32_0 : i32, i32
  }
  func.func @transform_3(%arg0: i32, %arg1: i32) -> (i32, i32, i32) {
    %c0_i32 = arith.constant 0 : i32
    %c0_i32_0 = arith.constant 0 : i32
    return %arg0, %c0_i32, %arg1 : i32, i32, i32
  }
}

</mosaic_0001>

<bundles_post_ra>
// kernel: out_conv.1
= control target key start
LH: loop header
LB: loop body
LE: loop exit
PB: predicated region body
PF: predicated region fallthrough
CT: control target
= control target key end

     0   :  { %s479_s12 = smov 0   ;;  %s481_s13 = smov 0   ;;  %s518_s0 = inlined_call_operand.vmem [shape: f32[2,4,256], index: 0, kind: input, shape index: {}]   ;;  %s519_s1 = inlined_call_operand.vmem [shape: f32[8,4], index: 1, kind: input, shape index: {}]   ;;  %s520_s2 = inlined_call_operand.vmem [shape: f32[8,1], index: 2, kind: input, shape index: {}]   ;;  %s521_s3 = inlined_call_operand.vmem [shape: f32[2,8,256], index: 3, kind: output, shape index: {}]  }
   0x1   :  { %s483_s14 = smov 0  }
   0x2 LB: > { %s25_s15 = sadd.s32 1, %s451_s13  ;;  %p393_p0 = scmp.ge.s32.totalorder %s455_s14, 1  ;;  %s455_s14 = sphi %s483_s14, %s13_s14   ;;  %s451_s13 = sphi %s481_s13, %s523_s13   ;;  %s447_s12 = sphi %s479_s12, %s522_s12  }
   0x3   : > { %p27_p1 = scmp.ge.s32.totalorder %s25_s15, 2  ;;  %p158_p2 = scmp.lt.s32.totalorder %s455_s14, 3 }
   0x5   : > { %s525_s15 = smov (%p27_p1, %s25_s15), 0  ;;  %p159_p3 = pnand %p393_p0, %p158_p2 }
   0x6   : > { %p191_p4 = scmp.lt.s32.totalorder (!%p159_p3), %s447_s12, 1 }
   0x7   : > { %162 = sbr.rel (%p159_p3) target bundleno = 218 (0xda), region = 32 }
   0xc   : > { %v457_v0 = vmov 0.0   ;;  %v458_v1 = vmov 0   ;;  %v211_v2 = vld [vmem:[%s520_s2] sm:$0xff]  ;;  %s527_s12 = smov (!%p191_p4, %s447_s12), 1  ;;  %vm224_vm0 = vcmask 1043456   ;;  %vm220_vm1 = vcmask 31744  }
   0xd   : > { %293 = vmatprep.mubr.f32.mxu0 %v457_v0  ;;  %431 = vset.pattern.permute.xlu0 %v458_v1  ;;  %s403_s18 = sshll.u32 %s527_s12, 3  ;;  %v210_v5 = vld [vmem:[%s519_s1] sm:$0xff]  ;;  %s404_s24 = sshll.u32 %s527_s12, 4 }
   0xe   : > { %215 = vperm.xlu0 %431, %v211_v2   ;;  %s198_s21 = scalar_lea.vmem %s518_s0, %s403_s18  ;;  %s208_s27 = scalar_lea.vmem %s521_s3, %s404_s24 }
   0xf   : > { %v212_v3 = vld [vmem:[%s198_s21] sm:$0xff] }
  0x10   : > { %v219_v4 = vcombine.high %v212_v3, %v212_v3 }
  0x12   : > { %398 = vmatprep.subr.msk.mxu0 %vm224_vm0, %v219_v4 }
  0x13   : > { %399 = vmatpush1.msk.msra.mxu0 %vm224_vm0, %v212_v3 }
  0x14   : > { %400 = vmatmul.mubr.msk.f32.vlgmr.msra.gmra.mxu0 %vm220_vm1, %v210_v5 }
  0x89   : > { %v216_v6 = vpop.permute.xlu0 %215 }
  0xd4   : > { %v295_v7 = vpop.f32.mrf.mxu0 }
  0xd5   : > { %v296_v8 = vadd.f32 %v295_v7, %v216_v6 }
  0xd6   : > { %v297_v9 = vpop.f32.mrf.mxu0 }
  0xd7   : > { %300 = vst [vmem:[%s208_s27] sm:$0xff] %v296_v8  ;;  %v298_v10 = vadd.f32 %v297_v9, %v216_v6 }
  0xd9   : > { %301 = vst [vmem:[%s208_s27 + $0x8] sm:$0xff] %v298_v10 }
  0xda PF: > { %s13_s14 = sadd.s32 1, %s455_s14   ;;  %s522_s12 = smov %s451_s13 }
  0xdb   : > { %p10_p5 = scmp.ge.s32.totalorder %s13_s14, 4   ;;  %s523_s13 = smov %s525_s15 }
  0xdd   :  { %12 = sbr.rel (!%p10_p5) target bundleno = 2 (0x2), region = 62 }

</bundles_post_ra>
